<compile_context>
chip_gen: v6e
topology: v6e:2x2x1
jax: 0.10.0
libtpu: 0.0.40
codegen_flags: <defaults>
</compile_context>

<pallas_src>
import math

import jax
import jax.numpy as jnp
from jax import lax
from jax.experimental import pallas as pl
from jax.experimental.pallas import tpu as pltpu


def _round_up(x: int, m: int) -> int:
    return ((x + m - 1) // m) * m


def _device_kind() -> str:
    try:
        return jax.devices()[0].device_kind.lower()
    except Exception:
        return ""


def _as_2d(x):
    """Copy-less 2-D view of x (never pads)."""
    n = int(x.size)
    if x.ndim >= 2 and x.shape[-1] >= 128:
        return x.reshape(-1, x.shape[-1])
    for c in (512, 256, 128):
        if n % c == 0:
            return x.reshape(n // c, c)
    if x.ndim >= 2:
        return x.reshape(-1, x.shape[-1])
    return x.reshape(1, n)


def _make_kernel(cutoff: float, rows: int, row_tile: int, cols: int,
                 steps: int, need_mask: bool):
    cutoff_f = float(cutoff)

    def kernel(o_ref, l_ref, w_ref, part_ref, acc_ref):
        i = pl.program_id(1)  # reduction axis within this split

        @pl.when(i == 0)
        def _init():
            acc_ref[...] = jnp.zeros_like(acc_ref)

        # In-kernel upcasts: inputs may arrive as bf16 / int8 / int32 / f32.
        out = o_ref[...].astype(jnp.float32)
        lab = l_ref[...]
        w = w_ref[...].astype(jnp.float32)

        lab_is_zero = lab == 0
        lab_f = lab.astype(jnp.float32)
        targ = jnp.where(lab_is_zero, cutoff_f, lab_f - 1.0)
        diff = out - targ
        sqer = diff * diff

        keep = jnp.logical_not(
            (lab_is_zero & (out >= cutoff_f)) | ((lab == 1) & (out <= 0.0)))
        if need_mask:
            # Ragged-tail handling: mask rows past the true row count of the
            # (partial) last block.  rows/row_tile/steps are static Python ints.
            g = pl.program_id(0) * steps + i
            row_ids = (g * row_tile
                       + lax.broadcasted_iota(jnp.int32, (row_tile, cols), 0))
            keep = keep & (row_ids < rows)

        # Single select; zeroes the *weighted* term for ignored / masked rows.
        acc_ref[...] += jnp.where(keep, w * sqer, 0.0)

        @pl.when(i == steps - 1)
        def _fin():
            # One XLU sublane reduction per split; lane reduction + divide by N
            # happen outside the kernel.  Output block is (8, cols)-aligned; the
            # partial sum lives in row 0, rows 1..7 are written as zeros.
            part = jnp.sum(acc_ref[...], axis=0, keepdims=True)       # (1, cols)
            rid = lax.broadcasted_iota(jnp.int32, (8, cols), 0)
            part_ref[...] = jnp.where(rid == 0, part, 0.0)

    return kernel


def regression_model_loss(output, labels, sample_weights, *, max_distance: int,
                          target_tile_elems: int | None = None):
    """output, labels, sample_weights: identical shapes (any dtype).
    Returns the scalar f32 loss."""
    cutoff = float(max_distance - 1)
    total = int(math.prod(output.shape))
    if total == 0:
        return jnp.float32(0.0)   # guard mean of empty input

    o2 = _as_2d(output)
    l2 = _as_2d(labels)
    w2 = _as_2d(sample_weights)
    rows, cols = o2.shape

    kind = _device_kind()
    is_v7 = "v7" in kind  # 2 TensorCores / chip, faster HBM

    # Per-input tile size (elements).  ~1 MiB f32 tiles on 1-TC chips, ~2 MiB
    # on v7x to amortize the per-step overhead against its faster HBM.
    if target_tile_elems is None:
        target_tile_elems = (1 << 19) if is_v7 else (1 << 18)

    rt = max(1, target_tile_elems // cols)
    rt = max(8, (rt // 8) * 8)                      # sublane-aligned
    row_tile = min(rt, _round_up(rows, 8))
    steps_total = -(-rows // row_tile)

    # 2-way core-parallel split only on v7x (and only when it divides cleanly);
    # on 1-TC chips the split axis would just be a serial loop (pure overhead).
    use_split = is_v7 and steps_total >= 2 and steps_total % 2 == 0
    num_splits = 2 if use_split else 1
    steps = steps_total // num_splits
    need_mask = (rows % row_tile) != 0

    kernel = _make_kernel(cutoff, rows, row_tile, cols, steps, need_mask)

    def in_map(s, i):
        return (s * steps + i, 0)

    bs_kwargs = {"pipeline_mode": pl.Buffered(3)} if is_v7 else {}
    in_specs = [pl.BlockSpec((row_tile, cols), in_map, **bs_kwargs)
                for _ in range(3)]

    if use_split:
        dim_sem = (pltpu.CORE_PARALLEL, pltpu.ARBITRARY)
    else:
        dim_sem = ("parallel", "arbitrary")

    in_bytes = total * (o2.dtype.itemsize + l2.dtype.itemsize
                        + w2.dtype.itemsize)
    out_bytes = 8 * num_splits * cols * 4

    partials = pl.pallas_call(
        kernel,
        out_shape=jax.ShapeDtypeStruct((8 * num_splits, cols), jnp.float32),
        grid_spec=pltpu.PrefetchScalarGridSpec(
            num_scalar_prefetch=0,
            grid=(num_splits, steps),
            in_specs=in_specs,
            out_specs=pl.BlockSpec((8, cols), lambda s, i: (s, 0)),
            scratch_shapes=[pltpu.VMEM((row_tile, cols), jnp.float32)],
        ),
        compiler_params=pltpu.CompilerParams(
            dimension_semantics=dim_sem,
            vmem_limit_bytes=(48 << 20) if is_v7 else (32 << 20),
        ),
        cost_estimate=pl.CostEstimate(
            flops=8 * total,
            transcendentals=0,
            bytes_accessed=in_bytes + out_bytes,
        ),
    )(o2, l2, w2)

    # Final lane reduction + mean over the TRUE element count (masked / ignored
    # elements contributed exactly zero to the partial sums).
    return jnp.sum(partials) / jnp.float32(total)


def regression_model_loss_ref(output, labels, sample_weights, *, max_distance: int):
    cutoff = max_distance - 1
    out = output.astype(jnp.float32)
    w = sample_weights.astype(jnp.float32)
    targ = jnp.where(labels == 0, cutoff, labels - 1).astype(jnp.float32)
    sqer = (out - targ) ** 2
    ign = ((labels == 0) & (out >= cutoff)) | ((labels == 1) & (out <= 0.0))
    return jnp.mean(w * jnp.where(ign, 0.0, sqer))


if __name__ == "__main__":
    key = jax.random.PRNGKey(0)
    max_distance = 10

    def make_case(k, shape):
        k1, k2, k3 = jax.random.split(k, 3)
        out = jax.random.uniform(k1, shape, dtype=jnp.float32,
                                 minval=-1.0, maxval=float(max_distance))
        lab = jax.random.randint(k2, shape, 0, max_distance, dtype=jnp.int32)
        w = jax.random.uniform(k3, shape, dtype=jnp.float32,
                               minval=0.0, maxval=2.0)
        return out, lab, w

    k1, k2, k3 = jax.random.split(key, 3)
    cases = [
        (make_case(k1, (2, 1024)), None),    # ragged rows vs 8-row tile (masked)
        (make_case(k2, (5, 192)), None),     # lane width not a multiple of 128
        (make_case(k3, (50, 256)), 4096),    # multi-step reduction + ragged tail
    ]

    loss = None
    for (out, lab, w), tile in cases:
        loss = regression_model_loss(out, lab, w, max_distance=max_distance,
                                     target_tile_elems=tile)
        loss = jax.block_until_ready(loss)
        ref = regression_model_loss_ref(out, lab, w, max_distance=max_distance)
        assert jnp.allclose(loss, ref, rtol=1e-5, atol=1e-5), (loss, ref)

    print("KERNEL_OK")
</pallas_src>

<mosaic_0001>
module attributes {stable_mosaic.version = 11 : i64} {
  func.func @kernel(%arg0: i32, %arg1: i32, %arg2: memref<8x1024xf32, #tpu.memory_space<vmem>>, %arg3: memref<8x1024xi32, #tpu.memory_space<vmem>>, %arg4: memref<8x1024xf32, #tpu.memory_space<vmem>>, %arg5: memref<8x1024xf32, #tpu.memory_space<vmem>>, %arg6: memref<8x1024xf32, #tpu.memory_space<vmem>>) attributes {dimension_semantics = [#tpu.dimension_semantics<parallel>, #tpu.dimension_semantics<arbitrary>], iteration_bounds = array<i64: 1, 1>, scalar_prefetch = 0 : i64, scratch_operands = 1 : i64, tpu.core_type = #tpu.core_type<tc>, window_params = [{transform_indices = @transform_0, window_bounds = array<i64: 8, 1024>}, {transform_indices = @transform_1, window_bounds = array<i64: 8, 1024>}, {transform_indices = @transform_2, window_bounds = array<i64: 8, 1024>}, {transform_indices = @transform_3, window_bounds = array<i64: 8, 1024>}]} {
    %c0_i32 = arith.constant 0 : i32
    %0 = arith.cmpi eq, %arg1, %c0_i32 : i32
    %1 = arith.extui %0 : i1 to i32
    %c0_i32_0 = arith.constant 0 : i32
    %2 = arith.cmpi ne, %1, %c0_i32_0 : i32
    scf.if %2 {
      %cst_19 = arith.constant 0.000000e+00 : f32
      %43 = vector.broadcast %cst_19 : f32 to vector<8x1024xf32>
      %c0_20 = arith.constant 0 : index
      %c0_21 = arith.constant 0 : index
      %44 = vector.load %arg6[%c0_20, %c0_21] : memref<8x1024xf32, #tpu.memory_space<vmem>>, vector<8x1024xf32>
      tpu.vector_store %arg6[%c0_20, %c0_21], %43 {strides = array<i32>} : memref<8x1024xf32, #tpu.memory_space<vmem>>, vector<8x1024xf32>,
    } else {
    }
    %c0 = arith.constant 0 : index
    %c0_1 = arith.constant 0 : index
    %3 = vector.load %arg2[%c0, %c0_1] : memref<8x1024xf32, #tpu.memory_space<vmem>>, vector<8x1024xf32>
    %c0_2 = arith.constant 0 : index
    %c0_3 = arith.constant 0 : index
    %4 = vector.load %arg3[%c0_2, %c0_3] : memref<8x1024xi32, #tpu.memory_space<vmem>>, vector<8x1024xi32>
    %c0_4 = arith.constant 0 : index
    %c0_5 = arith.constant 0 : index
    %5 = vector.load %arg4[%c0_4, %c0_5] : memref<8x1024xf32, #tpu.memory_space<vmem>>, vector<8x1024xf32>
    %c0_i32_6 = arith.constant 0 : i32
    %6 = vector.broadcast %c0_i32_6 : i32 to vector<8x1024xi32>
    %7 = arith.cmpi eq, %4, %6 : vector<8x1024xi32>
    %8 = arith.sitofp %4 : vector<8x1024xi32> to vector<8x1024xf32>
    %cst = arith.constant 1.000000e+00 : f32
    %9 = vector.broadcast %cst : f32 to vector<8x1024xf32>
    %10 = arith.subf %8, %9 : vector<8x1024xf32>
    %cst_7 = arith.constant 9.000000e+00 : f32
    %11 = vector.broadcast %cst_7 : f32 to vector<8x1024xf32>
    %12 = arith.select %7, %11, %10 : vector<8x1024xi1>, vector<8x1024xf32>
    %13 = arith.subf %3, %12 : vector<8x1024xf32>
    %14 = arith.mulf %13, %13 : vector<8x1024xf32>
    %cst_8 = arith.constant 9.000000e+00 : f32
    %15 = vector.broadcast %cst_8 : f32 to vector<8x1024xf32>
    %16 = arith.cmpf oge, %3, %15 : vector<8x1024xf32>
    %17 = arith.andi %7, %16 : vector<8x1024xi1>
    %c1_i32 = arith.constant 1 : i32
    %18 = vector.broadcast %c1_i32 : i32 to vector<8x1024xi32>
    %19 = arith.cmpi eq, %4, %18 : vector<8x1024xi32>
    %cst_9 = arith.constant 0.000000e+00 : f32
    %20 = vector.broadcast %cst_9 : f32 to vector<8x1024xf32>
    %21 = arith.cmpf ole, %3, %20 : vector<8x1024xf32>
    %22 = arith.andi %19, %21 : vector<8x1024xi1>
    %23 = arith.ori %17, %22 : vector<8x1024xi1>
    %cst_10 = arith.constant dense<true> : vector<8x1024xi1>
    %24 = arith.xori %23, %cst_10 : vector<8x1024xi1>
    %c1_i32_11 = arith.constant 1 : i32
    %25 = arith.muli %arg0, %c1_i32_11 : i32
    %26 = arith.addi %25, %arg1 : i32
    %c8_i32 = arith.constant 8 : i32
    %27 = arith.muli %26, %c8_i32 : i32
    %28 = tpu.iota {dimensions = array<i32: 0>} : vector<8x1024xi32>
    %29 = vector.broadcast %27 : i32 to vector<8x1024xi32>
    %30 = arith.addi %29, %28 : vector<8x1024xi32>
    %c2_i32 = arith.constant 2 : i32
    %31 = vector.broadcast %c2_i32 : i32 to vector<8x1024xi32>
    %32 = arith.cmpi slt, %30, %31 : vector<8x1024xi32>
    %33 = arith.andi %24, %32 : vector<8x1024xi1>
    %c0_12 = arith.constant 0 : index
    %c0_13 = arith.constant 0 : index
    %34 = vector.load %arg6[%c0_12, %c0_13] : memref<8x1024xf32, #tpu.memory_space<vmem>>, vector<8x1024xf32>
    %35 = arith.mulf %5, %14 : vector<8x1024xf32>
    %cst_14 = arith.constant 0.000000e+00 : f32
    %36 = vector.broadcast %cst_14 : f32 to vector<8x1024xf32>
    %37 = arith.select %33, %35, %36 : vector<8x1024xi1>, vector<8x1024xf32>
    %38 = arith.addf %34, %37 : vector<8x1024xf32>
    %c0_15 = arith.constant 0 : index
    %c0_16 = arith.constant 0 : index
    %39 = vector.load %arg6[%c0_15, %c0_16] : memref<8x1024xf32, #tpu.memory_space<vmem>>, vector<8x1024xf32>
    tpu.vector_store %arg6[%c0_15, %c0_16], %38 {strides = array<i32>} : memref<8x1024xf32, #tpu.memory_space<vmem>>, vector<8x1024xf32>,
    %c0_i32_17 = arith.constant 0 : i32
    %40 = arith.cmpi eq, %arg1, %c0_i32_17 : i32
    %41 = arith.extui %40 : i1 to i32
    %c0_i32_18 = arith.constant 0 : i32
    %42 = arith.cmpi ne, %41, %c0_i32_18 : i32
    scf.if %42 {
      %c0_19 = arith.constant 0 : index
      %c0_20 = arith.constant 0 : index
      %43 = vector.load %arg6[%c0_19, %c0_20] : memref<8x1024xf32, #tpu.memory_space<vmem>>, vector<8x1024xf32>
      %cst_21 = arith.constant dense<0.000000e+00> : vector<1024xf32>
      %44 = vector.multi_reduction <add>, %43, %cst_21 [0] : vector<8x1024xf32> to vector<1024xf32>
      %45 = vector.shape_cast %44 : vector<1024xf32> to vector<1x1024xf32>
      %46 = tpu.iota {dimensions = array<i32: 0>} : vector<8x1024xi32>
      %c0_i32_22 = arith.constant 0 : i32
      %47 = vector.broadcast %c0_i32_22 : i32 to vector<8x1024xi32>
      %48 = arith.cmpi eq, %46, %47 : vector<8x1024xi32>
      %cst_23 = arith.constant 0.000000e+00 : f32
      %49 = vector.shape_cast %45 : vector<1x1024xf32> to vector<1x1024xf32>
      %50 = vector.broadcast %49 : vector<1x1024xf32> to vector<8x1024xf32>
      %51 = vector.broadcast %cst_23 : f32 to vector<8x1024xf32>
      %52 = arith.select %48, %50, %51 : vector<8x1024xi1>, vector<8x1024xf32>
      %c0_24 = arith.constant 0 : index
      %c0_25 = arith.constant 0 : index
      %53 = vector.load %arg5[%c0_24, %c0_25] : memref<8x1024xf32, #tpu.memory_space<vmem>>, vector<8x1024xf32>
      tpu.vector_store %arg5[%c0_24, %c0_25], %52 {strides = array<i32>} : memref<8x1024xf32, #tpu.memory_space<vmem>>, vector<8x1024xf32>,
    } else {
    }
    return
  }
  func.func @transform_0(%arg0: i32, %arg1: i32) -> (i32, i32) {
    %c1_i32 = arith.constant 1 : i32
    %0 = arith.muli %arg0, %c1_i32 : i32
    %1 = arith.addi %0, %arg1 : i32
    %c0_i32 = arith.constant 0 : i32
    %c0_i32_0 = arith.constant 0 : i32
    return %1, %c0_i32 : i32, i32
  }
  func.func @transform_1(%arg0: i32, %arg1: i32) -> (i32, i32) {
    %c1_i32 = arith.constant 1 : i32
    %0 = arith.muli %arg0, %c1_i32 : i32
    %1 = arith.addi %0, %arg1 : i32
    %c0_i32 = arith.constant 0 : i32
    %c0_i32_0 = arith.constant 0 : i32
    return %1, %c0_i32 : i32, i32
  }
  func.func @transform_2(%arg0: i32, %arg1: i32) -> (i32, i32) {
    %c1_i32 = arith.constant 1 : i32
    %0 = arith.muli %arg0, %c1_i32 : i32
    %1 = arith.addi %0, %arg1 : i32
    %c0_i32 = arith.constant 0 : i32
    %c0_i32_0 = arith.constant 0 : i32
    return %1, %c0_i32 : i32, i32
  }
  func.func @transform_3(%arg0: i32, %arg1: i32) -> (i32, i32) {
    %c0_i32 = arith.constant 0 : i32
    %c0_i32_0 = arith.constant 0 : i32
    return %arg0, %c0_i32 : i32, i32
  }
}

</mosaic_0001>

<bundles_post_ra>
// kernel: tpu_custom_call.1
= control target key start
LH: loop header
LB: loop body
LE: loop exit
PB: predicated region body
PF: predicated region fallthrough
CT: control target
= control target key end

     0   :  { %8 = vsyncpa [#allocation4], 0  ;;  %s1002_s0 = inlined_call_operand.hbm [shape: f32[2,1024], index: 0, kind: input, shape index: {}]   ;;  %s1003_s1 = inlined_call_operand.hbm [shape: s32[2,1024], index: 1, kind: input, shape index: {}]   ;;  %s1004_s2 = inlined_call_operand.hbm [shape: f32[2,1024], index: 2, kind: input, shape index: {}]   ;;  %s1005_s3 = inlined_call_operand.hbm [shape: f32[8,1024], index: 3, kind: output, shape index: {}]  }
   0x1   :  { %9 = vsyncpa [#allocation7], 0 }
   0x2   :  { %10 = vsyncpa [#allocation5], 0 }
   0x3   :  { %20 = vsyncadd [#allocation4], 768  ;;  %s616_s12 = smov [#allocation3]  }
   0x4   :  { %s26_s13 = sshll.u32 %s616_s12, 4  ;;  %s27_s13 = int_to_ptr.vmem [resolvable:$true] %s26_s13 }
   0x5   :  { %s538_s14 = scalar_lea.vmem %s27_s13, 256  ;;  %s542_s15 = scalar_lea.vmem %s27_s13, 1024 }
   0x6   :  { %p539_p0 = scmp.ne.s32.totalorder %s27_s13, %s538_s14  ;;  %p543_p1 = scmp.lt.s32.totalorder %s27_s13, %s27_s13 }
   0x7   :  { %p544_p2 = scmp.lt.s32.totalorder %s542_s15, %s538_s14 }
   0x9   :  { %p545_p3 = por %p544_p2, %p543_p1 }
   0xb   :  { %p546_p4 = pnand %p545_p3, %p539_p0 }
   0xd   :  { %549 = shalt.err (!%p546_p4)
}
   0xe   :  { %s617_s16 = smov 256   ;;  %s618_s17 = smov 16  }
   0xf   :  { %32 = dma.hbm_to_vmem [thread:$0]  %s1002_s0, 256, %s27_s13, [#allocation4], %s617_s16, %s617_s16, %s618_s17  }
  0x10   :  { %42 = vsyncadd [#allocation7], 768  ;;  %s619_s20 = smov [#allocation6]  }
  0x11   :  { %s48_s21 = sshll.u32 %s619_s20, 4  ;;  %s49_s21 = int_to_ptr.vmem [resolvable:$true] %s48_s21 }
  0x12   :  { %s558_s22 = scalar_lea.vmem %s49_s21, 256  ;;  %s562_s23 = scalar_lea.vmem %s49_s21, 1024 }
  0x13   :  { %p559_p5 = scmp.ne.s32.totalorder %s49_s21, %s558_s22  ;;  %p563_p6 = scmp.lt.s32.totalorder %s49_s21, %s49_s21 }
  0x14   :  { %p564_p7 = scmp.lt.s32.totalorder %s562_s23, %s558_s22 }
  0x16   :  { %p565_p8 = por %p564_p7, %p563_p6 }
  0x18   :  { %p566_p9 = pnand %p565_p8, %p559_p5 }
  0x1a   :  { %569 = shalt.err (!%p566_p9)
}
  0x1b   :  { %54 = dma.hbm_to_vmem [thread:$0]  %s1003_s1, 256, %s49_s21, [#allocation7], %s617_s16, %s617_s16, %s618_s17  }
  0x1c   :  { %64 = vsyncadd [#allocation7], 768  ;;  %s620_s0 = smov [#allocation8]  }
  0x1d   :  { %s70_s26 = sshll.u32 %s620_s0, 4  ;;  %s71_s26 = int_to_ptr.vmem [resolvable:$true] %s70_s26 }
  0x1e   :  { %s578_s27 = scalar_lea.vmem %s71_s26, 256  ;;  %s582_s28 = scalar_lea.vmem %s71_s26, 1024 }
  0x1f   :  { %p579_p10 = scmp.ne.s32.totalorder %s71_s26, %s578_s27  ;;  %p583_p11 = scmp.lt.s32.totalorder %s71_s26, %s71_s26 }
  0x20   :  { %p584_p12 = scmp.lt.s32.totalorder %s582_s28, %s578_s27 }
  0x22   :  { %p585_p13 = por %p584_p12, %p583_p11 }
  0x24   :  { %p586_p0 = pnand %p585_p13, %p579_p10 }
  0x26   :  { %589 = shalt.err (!%p586_p0)
}
  0x27   :  { %76 = dma.hbm_to_vmem [thread:$0]  %s1004_s2, 256, %s71_s26, [#allocation7], %s617_s16, %s617_s16, %s618_s17  }
  0x28   :  { %610 = dma.done.wait [#allocation4], 1024  }
  0x29   :  { %611 = vsyncadd [#allocation4], 4294966272 }
  0x2a   :  { %612 = dma.done.wait [#allocation7], 2048  }
  0x2b   :  { %613 = vsyncadd [#allocation7], 4294965248  ;;  %v243_v0 = vlaneseq  ;;  %v621_v2 = vmov 269488144   ;;  %v622_v4 = vmov 842150450  }
  0x2c   :  { %v250_v3 = vunpack.c.l.s4 %v621_v2  ;;  %v257_v5 = vunpack.c.l.s4 %v622_v4  ;;  %v623_v6 = vmov 1414812756   ;;  %v624_v8 = vmov 1987475062   ;;  %v113_v10 = vld [vmem:[#allocation3] sm:$0xff]  ;;  %v115_v11 = vld [vmem:[#allocation3 + $0x10] sm:$0xff] }
  0x2d   :  { %v667_v1 = vshrl.u32 %v243_v0, 7  ;;  %v264_v7 = vunpack.c.l.s4 %v623_v6  ;;  %v271_v9 = vunpack.c.l.s4 %v624_v8  ;;  %v117_v12 = vld [vmem:[#allocation3 + $0x20] sm:$0xff]  ;;  %v119_v15 = vld [vmem:[#allocation3 + $0x30] sm:$0xff]  ;;  %vm185_vm1 = vcmp.ge.f32.partialorder %v113_v10, 9.0  ;;  %v734_v4 = vld [vmem:[#allocation6 + $0x18] sm:$0xff]  ;;  %s628_s1 = smov [#allocation9]  }
  0x2e   :  { %v251_v13 = vunpack.c.0.s8 %v250_v3  ;;  %v258_v14 = vunpack.c.0.s8 %v257_v5  ;;  %v121_v16 = vld [vmem:[#allocation6] sm:$0xff]  ;;  %v123_v17 = vld [vmem:[#allocation6 + $0x10] sm:$0xff]  ;;  %v625_v18 = vmov 0   ;;  %vm187_vm2 = vcmp.ge.f32.partialorder %v115_v11, 9.0  ;;  %v732_v3 = vld [vmem:[#allocation6 + $0x8] sm:$0xff]  ;;  %s499_s2 = sshll.u32 %s628_s1, 4  ;;  %s500_s2 = int_to_ptr.vmem [resolvable:$true] %s499_s2 }
  0x2f   :  { %vm247_vm0 = vcmp.lt.s32.totalorder %v667_v1, 2  ;;  %v265_v20 = vunpack.c.0.s8 %v264_v7  ;;  %v272_v21 = vunpack.c.0.s8 %v271_v9  ;;  %v125_v22 = vld [vmem:[#allocation6 + $0x20] sm:$0xff]  ;;  %v127_v23 = vld [vmem:[#allocation6 + $0x30] sm:$0xff]  ;;  %v145_v24 = vcvt.s32.f32 %v121_v16  ;;  %v750_v8 = vld [vmem:[#allocation6 + $0x28] sm:$0xff]  ;;  %s590_s4 = scalar_lea.vmem %s500_s2, 1024  ;;  %p595_p2 = scmp.lt.s32.totalorder %s500_s2, %s500_s2 }
  0x30   :  { %v670_v19 = vsel %vm247_vm0, 1, %v625_v18  ;;  %v147_v25 = vcvt.s32.f32 %v123_v17  ;;  %vm189_vm3 = vcmp.ge.f32.partialorder %v117_v12, 9.0  ;;  %vm137_vm4 = vcmp.eq.s32.totalorder %v121_v16, 0  ;;  %v129_v55 = vld [vmem:[#allocation8] sm:$0xff]  ;;  %v131_v60 = vld [vmem:[#allocation8 + $0x10] sm:$0xff]  ;;  %p591_p1 = scmp.ne.s32.totalorder %s500_s2, %s590_s4  ;;  %p596_p3 = scmp.lt.s32.totalorder %s590_s4, %s590_s4 }
  0x31   :  { %vm139_vm5 = vcmp.eq.s32.totalorder %v123_v17, 0  ;;  %v149_v26 = vcvt.s32.f32 %v125_v22  ;;  %v151_v27 = vcvt.s32.f32 %v127_v23  ;;  %vm141_vm6 = vcmp.eq.s32.totalorder %v125_v22, 0  ;;  %vm673_vm8 = vmand %vm137_vm4, %vm185_vm1  ;;  %v133_v61 = vld [vmem:[#allocation8 + $0x20] sm:$0xff]  ;;  %v135_v5 = vld [vmem:[#allocation8 + $0x30] sm:$0xff] }
  0x32   :  { %v509_v28 = vadd.f32 -1.0, %v145_v24  ;;  %v511_v29 = vadd.f32 -1.0, %v147_v25  ;;  %vm191_vm7 = vcmp.ge.f32.partialorder %v119_v15, 9.0  ;;  %vm143_vm9 = vcmp.eq.s32.totalorder %v127_v23, 0  ;;  %vm677_vm10 = vmand %vm139_vm5, %vm187_vm2  ;;  %p597_p4 = por %p596_p3, %p595_p2 }
  0x33   :  { %v513_v31 = vadd.f32 -1.0, %v149_v26  ;;  %v515_v32 = vadd.f32 -1.0, %v151_v27  ;;  %vm201_vm11 = vcmp.eq.s32.totalorder %v121_v16, 1  ;;  %vm682_vm12 = vmand %vm141_vm6, %vm189_vm3  ;;  %vm203_vm13 = vcmp.eq.s32.totalorder %v123_v17, 1  ;;  %v120_v26 = vld [vmem:[#allocation3 + $0x38] sm:$0xff] }
  0x34   :  { %v161_v34 = vsel %vm137_vm4, 9.0, %v509_v28  ;;  %v163_v35 = vsel %vm139_vm5, 9.0, %v511_v29  ;;  %vm209_vm14 = vcmp.le.f32.partialorder %v113_v10, 0.0  ;;  %vm686_vm15 = vmand %vm143_vm9, %vm191_vm7  ;;  %vm205_vm0 = vcmp.eq.s32.totalorder %v125_v22, 1  ;;  %p598_p5 = pnand %p597_p4, %p591_p1 }
  0x35   :  { %v165_v37 = vsel %vm141_vm6, 9.0, %v513_v31  ;;  %v254_v39 = vsub.s32 %v251_v13, %v667_v1  ;;  %v261_v40 = vsub.s32 %v258_v14, %v667_v1  ;;  %v167_v41 = vsel %vm143_vm9, 9.0, %v515_v32  ;;  %vm693_vm3 = vmand %vm201_vm11, %vm209_vm14  ;;  %v770_v14 = vld [vmem:[#allocation3 + $0x8] sm:$0xff] }
  0x36   :  { %vm207_vm1 = vcmp.eq.s32.totalorder %v127_v23, 1  ;;  %vm211_vm2 = vcmp.le.f32.partialorder %v115_v11, 0.0  ;;  %vm213_vm4 = vcmp.le.f32.partialorder %v117_v12, 0.0  ;;  %v169_v43 = vsub.f32 %v113_v10, %v161_v34  ;;  %vm225_vm11 = vmor %vm673_vm8, %vm693_vm3 }
  0x37   :  { %v171_v44 = vsub.f32 %v115_v11, %v163_v35  ;;  %vm215_vm5 = vcmp.le.f32.partialorder %v119_v15, 0.0  ;;  %vm698_vm6 = vmand %vm203_vm13, %vm211_vm2  ;;  %v268_v46 = vsub.s32 %v265_v20, %v667_v1  ;;  %v173_v47 = vsub.f32 %v117_v12, %v165_v37  ;;  %v788_v20 = vld [vmem:[#allocation3 + $0x28] sm:$0xff] }
  0x38   :  { %vm703_vm7 = vmand %vm205_vm0, %vm213_vm4  ;;  %v275_v49 = vsub.s32 %v272_v21, %v667_v1  ;;  %v175_v50 = vsub.f32 %v119_v15, %v167_v41  ;;  %v626_v52 = vmov 1983009808   ;;  %v255_v54 = vrot.slane %v670_v19, %v254_v39  ;;  %v772_v15 = vld [vmem:[#allocation6 + $0x38] sm:$0xff] }
  0x39   :  { %vm708_vm9 = vmand %vm207_vm1, %vm215_vm5  ;;  %v326_v53 = vunpack.c.l.s4 %v626_v52  ;;  %v177_v56 = vmul.f32 %v169_v43, %v169_v43  ;;  %v179_v57 = vmul.f32 %v171_v44, %v171_v44  ;;  %v262_v58 = vrot.slane %v670_v19, %v261_v40 }
  0x3a   :  { %vm227_vm13 = vmor %vm677_vm10, %vm698_vm6  ;;  %v269_v59 = vrot.slane %v670_v19, %v268_v46  ;;  %v181_v62 = vmul.f32 %v173_v47, %v173_v47  ;;  %v276_v63 = vrot.slane %v670_v19, %v275_v49  ;;  %v183_v0 = vmul.f32 %v175_v50, %v175_v50  ;;  %v116_v19 = vld [vmem:[#allocation3 + $0x18] sm:$0xff] }
  0x3b   :  { %vm229_vm14 = vmor %vm682_vm12, %vm703_vm7  ;;  %v327_v2 = vunpack.c.0.s8 %v326_v53  ;;  %vm1006_vm1 = vmmov 1   ;;  %vm746_vm4 = vcmp.ne.s32.totalorder %v255_v54, 0  ;;  %vm762_vm8 = vcmp.ne.s32.totalorder %v262_v58, 0 }
  0x3c   :  { %vm231_vm0 = vmor %vm686_vm15, %vm708_vm9  ;;  %vm766_vm3 = vcmp.ne.s32.totalorder %v269_v59, 0  ;;  %v1034_v11 = vmov 0  ;;  %v297_v12 = vmul.f32 %v177_v56, %v129_v55  ;;  %v299_v13 = vmul.f32 %v179_v57, %v131_v60 }
  0x3d   :  { %vm742_vm2 = vmxor %vm225_vm11, %vm1006_vm1  ;;  %v1035_v11 = vsel %vm766_vm3, 4294967295, %v1034_v11  ;;  %vm784_vm6 = vcmp.ne.s32.totalorder %v276_v63, 0  ;;  %v1038_v17 = vmov 0  ;;  %v301_v18 = vmul.f32 %v181_v62, %v133_v61 }
  0x3e   :  { %vm758_vm5 = vmxor %vm227_vm13, %vm1006_vm1  ;;  %v1039_v17 = vsel %vm784_vm6, 4294967295, %v1038_v17  ;;  %v146_v21 = vcvt.s32.f32 %v732_v3  ;;  %v148_v22 = vcvt.s32.f32 %v734_v4  ;;  %v303_v24 = vmul.f32 %v183_v0, %v135_v5 }
  0x3f   :  { %vm780_vm10 = vmxor %vm229_vm14, %vm1006_vm1  ;;  %v803_v25 = vsub.s32 %v327_v2, %v667_v1  ;;  %v150_v27 = vcvt.s32.f32 %v750_v8  ;;  %vm140_vm15 = vcmp.eq.s32.totalorder %v734_v4, 0  ;;  %vm142_vm9 = vcmp.eq.s32.totalorder %v750_v8, 0 }
  0x40   :  { %vm798_vm12 = vmxor %vm231_vm0, %vm1006_vm1  ;;  %v152_v28 = vcvt.s32.f32 %v772_v15  ;;  %vm186_vm0 = vcmp.ge.f32.partialorder %v770_v14, 9.0  ;;  %vm188_vm1 = vcmp.ge.f32.partialorder %v116_v19, 9.0  ;;  %vm190_vm7 = vcmp.ge.f32.partialorder %v788_v20, 9.0 }
  0x41   :  { %vm281_vm11 = vmand %vm742_vm2, %vm746_vm4  ;;  %v510_v31 = vadd.f32 -1.0, %v146_v21  ;;  %v512_v32 = vadd.f32 -1.0, %v148_v22  ;;  %v514_v36 = vadd.f32 -1.0, %v150_v27  ;;  %v132_v21 = vld [vmem:[#allocation8 + $0x18] sm:$0xff] }
  0x42   :  { %vm283_vm14 = vmand %vm758_vm5, %vm762_vm8  ;;  %v305_v29 = vsel %vm281_vm11, %v297_v12, 0.0  ;;  %v516_v38 = vadd.f32 -1.0, %v152_v28  ;;  %vm1042_vm11 = vcmp.eq.s32.totalorder %v732_v3, 0 }
  0x43   :  { %vm285_vm2 = vmand %vm780_vm10, %vm766_vm3  ;;  %v307_v30 = vsel %vm283_vm14, %v299_v13, 0.0  ;;  %v164_v49 = vsel %vm140_vm15, 9.0, %v512_v32  ;;  %v166_v51 = vsel %vm142_vm9, 9.0, %v514_v36  ;;  %vm216_vm14 = vcmp.le.f32.partialorder %v120_v26, 0.0 }
  0x44   :  { %vm287_vm5 = vmand %vm798_vm12, %vm784_vm6  ;;  %v309_v33 = vsel %vm285_vm2, %v301_v18, 0.0  ;;  %v321_v34 = vcombine.low %v305_v29, %v307_v30  ;;  %v322_v35 = vcombine.high %v305_v29, %v307_v30  ;;  %vm1056_vm6 = vcmp.eq.s32.totalorder %v732_v3, 1  ;;  %v134_v30 = vld [vmem:[#allocation8 + $0x28] sm:$0xff] }
  0x45   :  { %v311_v37 = vsel %vm287_vm5, %v303_v24, 0.0  ;;  %vm833_vm10 = vmand %vm1042_vm11, %vm186_vm0  ;;  %vm208_vm5 = vcmp.eq.s32.totalorder %v772_v15, 1  ;;  %v172_v60 = vsub.f32 %v116_v19, %v164_v49 }
  0x46   :  { %v323_v40 = vcombine.low %v309_v33, %v311_v37  ;;  %v331_v41 = vrot.slane %v321_v34, %v803_v25  ;;  %v324_v42 = vcombine.high %v309_v33, %v311_v37  ;;  %v338_v43 = vrot.slane %v322_v35, %v803_v25  ;;  %vm844_vm12 = vmand %vm140_vm15, %vm188_vm1 }
  0x47   :  { %vm1047_vm0 = vmmov %vm1042_vm11  ;;  %vm1050_vm1 = vcmp.ge.f32.partialorder %v120_v26, 9.0  ;;  %vm1055_vm15 = vcmp.le.f32.partialorder %v770_v14, 0.0 }
  0x48   :  { %v162_v45 = vsel %vm1047_vm0, 9.0, %v510_v31  ;;  %vm854_vm2 = vmand %vm142_vm9, %vm190_vm7  ;;  %v345_v47 = vrot.slane %v323_v40, %v803_v25  ;;  %v352_v48 = vrot.slane %v324_v42, %v803_v25  ;;  %vm1051_vm0 = vcmp.eq.s32.totalorder %v772_v15, 0  ;;  %v136_v31 = vld [vmem:[#allocation8 + $0x38] sm:$0xff] }
  0x49   :  { %vm867_vm13 = vmand %vm1051_vm0, %vm1050_vm1  ;;  %vm214_vm7 = vcmp.le.f32.partialorder %v788_v20, 0.0  ;;  %vm1059_vm1 = vcmp.le.f32.partialorder %v116_v19, 0.0  ;;  %vm1060_vm9 = vcmp.eq.s32.totalorder %v734_v4, 1  ;;  %v170_v59 = vsub.f32 %v770_v14, %v162_v45 }
  0x4a   :  { %vm1054_vm11 = vmmov %vm1051_vm0  ;;  %v353_v54 = vcombine.low %v331_v41, %v345_v47  ;;  %v354_v55 = vcombine.high %v331_v41, %v345_v47  ;;  %v355_v56 = vcombine.low %v338_v43, %v352_v48  ;;  %v356_v57 = vcombine.high %v338_v43, %v352_v48 }
  0x4b   :  { %v168_v52 = vsel %vm1054_vm11, 9.0, %v516_v38  ;;  %vm881_vm3 = vmand %vm1056_vm6, %vm1055_vm15  ;;  %vm1063_vm11 = vcmp.eq.s32.totalorder %v750_v8, 1  ;;  %v174_v4 = vsub.f32 %v788_v20, %v166_v51  ;;  %v178_v13 = vmul.f32 %v170_v59, %v170_v59  ;;  %v130_v20 = vld [vmem:[#allocation8 + $0x8] sm:$0xff] }
  0x4c   :  { %vm888_vm0 = vmand %vm1060_vm9, %vm1059_vm1  ;;  %v428_v62 = vrot.slane %v353_v54, 4  ;;  %v434_v63 = vrot.slane %v354_v55, 4  ;;  %v440_v0 = vrot.slane %v355_v56, 4  ;;  %v446_v2 = vrot.slane %v356_v57, 4 }
  0x4d   :  { %vm895_vm6 = vmand %vm1063_vm11, %vm214_vm7  ;;  %v176_v5 = vsub.f32 %v120_v26, %v168_v52  ;;  %v180_v14 = vmul.f32 %v172_v60, %v172_v60  ;;  %v182_v22 = vmul.f32 %v174_v4, %v174_v4  ;;  %vm1068_vm9 = vmmov 1  }
  0x4e   :  { %vm901_vm15 = vmand %vm208_vm5, %vm216_vm14  ;;  %v429_v6 = vadd.f32 %v428_v62, %v353_v54  ;;  %v435_v8 = vadd.f32 %v434_v63, %v354_v55  ;;  %v441_v9 = vadd.f32 %v440_v0, %v355_v56  ;;  %v447_v12 = vadd.f32 %v446_v2, %v356_v57 }
  0x4f   :  { %vm226_vm7 = vmor %vm833_vm10, %vm881_vm3  ;;  %v184_v23 = vmul.f32 %v176_v5, %v176_v5  ;;  %v298_v34 = vmul.f32 %v178_v13, %v130_v20  ;;  %v300_v35 = vmul.f32 %v180_v14, %v132_v21  ;;  %v302_v41 = vmul.f32 %v182_v22, %v134_v30 }
  0x50   :  { %vm228_vm14 = vmor %vm844_vm12, %vm888_vm0  ;;  %v430_v15 = vrot.slane %v429_v6, 2  ;;  %v436_v16 = vrot.slane %v435_v8, 2  ;;  %v442_v18 = vrot.slane %v441_v9, 2  ;;  %v448_v19 = vrot.slane %v447_v12, 2 }
  0x51   :  { %vm230_vm5 = vmor %vm854_vm2, %vm895_vm6  ;;  %vm476_vm2 = vcmp.eq.s32.totalorder %v667_v1, 0  ;;  %v304_v42 = vmul.f32 %v184_v23, %v136_v31  ;;  %vm1078_vm6 = vnez %v1035_v11 }
  0x52   :  { %vm928_vm11 = vmxor %vm226_vm7, %vm1068_vm9  ;;  %v431_v26 = vadd.f32 %v430_v15, %v429_v6  ;;  %v437_v27 = vadd.f32 %v436_v16, %v435_v8  ;;  %v443_v28 = vadd.f32 %v442_v18, %v441_v9  ;;  %v449_v29 = vadd.f32 %v448_v19, %v447_v12 }
  0x53   :  { %vm938_vm1 = vmxor %vm228_vm14, %vm1068_vm9 }
  0x54   :  { %vm948_vm3 = vmxor %vm230_vm5, %vm1068_vm9  ;;  %v432_v36 = vrot.slane %v431_v26, 1  ;;  %v438_v37 = vrot.slane %v437_v27, 1  ;;  %v444_v38 = vrot.slane %v443_v28, 1  ;;  %v450_v39 = vrot.slane %v449_v29, 1 }
  0x55   :  { %vm1075_vm10 = vmor %vm867_vm13, %vm901_vm15 }
  0x56   :  { %vm958_vm12 = vmxor %vm1075_vm10, %vm1068_vm9  ;;  %v433_v43 = vadd.f32 %v432_v36, %v431_v26  ;;  %v439_v44 = vadd.f32 %v438_v37, %v437_v27  ;;  %v445_v45 = vadd.f32 %v444_v38, %v443_v28  ;;  %v451_v46 = vadd.f32 %v450_v39, %v449_v29 }
  0x57   :  { %vm282_vm0 = vmand %vm928_vm11, %vm746_vm4  ;;  %vm1079_vm4 = vnez %v1039_v17 }
  0x58   :  { %vm284_vm13 = vmand %vm938_vm1, %vm762_vm8  ;;  %v306_v7 = vsel %vm282_vm0, %v298_v34, 0.0  ;;  %v477_v48 = vsel %vm476_vm2, %v433_v43, 0.0  ;;  %v478_v49 = vsel %vm476_vm2, %v439_v44, 0.0  ;;  %v479_v50 = vsel %vm476_vm2, %v445_v45, 0.0 }
  0x59   :  { %vm286_vm15 = vmand %vm948_vm3, %vm1078_vm6  ;;  %v308_v47 = vsel %vm284_vm13, %v300_v35, 0.0  ;;  %v480_v10 = vsel %vm476_vm2, %v451_v46, 0.0  ;;  %485 = vst [vmem:[#allocation9] sm:$0xff] %v477_v48 }
  0x5a   :  { %vm288_vm8 = vmand %vm958_vm12, %vm1079_vm4  ;;  %486 = vst [vmem:[#allocation9 + $0x8] sm:$0xff] %v478_v49  ;;  %v310_v11 = vsel %vm286_vm15, %v302_v41, 0.0  ;;  %v357_v52 = vcombine.low %v306_v7, %v308_v47  ;;  %v358_v53 = vcombine.high %v306_v7, %v308_v47 }
  0x5b   :  { %487 = vst [vmem:[#allocation9 + $0x10] sm:$0xff] %v479_v50  ;;  %488 = vst [vmem:[#allocation9 + $0x18] sm:$0xff] %v480_v10  ;;  %v312_v51 = vsel %vm288_vm8, %v304_v42, 0.0 }
  0x5c   :  { %v359_v54 = vcombine.low %v310_v11, %v312_v51  ;;  %v360_v55 = vcombine.high %v310_v11, %v312_v51  ;;  %v367_v56 = vrot.slane %v357_v52, %v803_v25  ;;  %v374_v57 = vrot.slane %v358_v53, %v803_v25 }
  0x5e   :  { %v381_v58 = vrot.slane %v359_v54, %v803_v25  ;;  %v388_v17 = vrot.slane %v360_v55, %v803_v25 }
  0x60   :  { %v389_v59 = vcombine.low %v367_v56, %v381_v58  ;;  %v390_v60 = vcombine.high %v367_v56, %v381_v58  ;;  %v391_v61 = vcombine.low %v374_v57, %v388_v17  ;;  %v392_v62 = vcombine.high %v374_v57, %v388_v17 }
  0x62   :  { %v452_v63 = vrot.slane %v389_v59, 4  ;;  %v458_v0 = vrot.slane %v390_v60, 4  ;;  %v464_v2 = vrot.slane %v391_v61, 4  ;;  %v470_v3 = vrot.slane %v392_v62, 4 }
  0x64   :  { %v453_v4 = vadd.f32 %v452_v63, %v389_v59  ;;  %v459_v5 = vadd.f32 %v458_v0, %v390_v60  ;;  %v465_v6 = vadd.f32 %v464_v2, %v391_v61  ;;  %v471_v8 = vadd.f32 %v470_v3, %v392_v62 }
  0x66   :  { %v454_v9 = vrot.slane %v453_v4, 2  ;;  %v460_v12 = vrot.slane %v459_v5, 2  ;;  %v466_v13 = vrot.slane %v465_v6, 2  ;;  %v472_v14 = vrot.slane %v471_v8, 2 }
  0x68   :  { %v455_v15 = vadd.f32 %v454_v9, %v453_v4  ;;  %v461_v16 = vadd.f32 %v460_v12, %v459_v5  ;;  %v467_v18 = vadd.f32 %v466_v13, %v465_v6  ;;  %v473_v25 = vadd.f32 %v472_v14, %v471_v8 }
  0x6a   :  { %v456_v19 = vrot.slane %v455_v15, 1  ;;  %v462_v20 = vrot.slane %v461_v16, 1  ;;  %v468_v21 = vrot.slane %v467_v18, 1  ;;  %v474_v22 = vrot.slane %v473_v25, 1 }
  0x6c   :  { %v457_v23 = vadd.f32 %v456_v19, %v455_v15  ;;  %v463_v24 = vadd.f32 %v462_v20, %v461_v16  ;;  %v469_v26 = vadd.f32 %v468_v21, %v467_v18  ;;  %v475_v27 = vadd.f32 %v474_v22, %v473_v25 }
  0x6e   :  { %v481_v28 = vsel %vm476_vm2, %v457_v23, 0.0  ;;  %v482_v29 = vsel %vm476_vm2, %v463_v24, 0.0  ;;  %v483_v30 = vsel %vm476_vm2, %v469_v26, 0.0  ;;  %v484_v31 = vsel %vm476_vm2, %v475_v27, 0.0 }
  0x6f   :  { %489 = vst [vmem:[#allocation9 + $0x20] sm:$0xff] %v481_v28  ;;  %490 = vst [vmem:[#allocation9 + $0x28] sm:$0xff] %v482_v29 }
  0x70   :  { %491 = vst [vmem:[#allocation9 + $0x30] sm:$0xff] %v483_v30  ;;  %492 = vst [vmem:[#allocation9 + $0x38] sm:$0xff] %v484_v31 }
  0x71   :  { %601 = shalt.err (!%p598_p5)
}
  0x72   :  { %502 = dma.vmem_to_hbm [thread:$0]  %s500_s2, 1024, %s1005_s3, [#allocation5]  }
  0x73   :  { %614 = dma.done.wait [#allocation5], 1024  }
  0x74   :  { %615 = vsyncadd [#allocation5], 4294966272 }
  0x75   :  { %506 = vsyncpa [#allocation4], 1 }
  0x76   :  { %507 = vsyncpa [#allocation7], 1 }
  0x77   :  { %508 = vsyncpa [#allocation5], 1 }

</bundles_post_ra>
